<compile_context>
chip_gen: v6e
topology: v6e:2x2x1
jax: 0.10.0
libtpu: 0.0.40
codegen_flags: <defaults>
</compile_context>

<pallas_src>
import functools

import jax
import jax.numpy as jnp
from jax.experimental import pallas as pl
from jax.experimental.pallas import tpu as pltpu


def _round_up(n, m):
    return ((n + m - 1) // m) * m


@functools.lru_cache(maxsize=1)
def _weight_pipeline_kwargs():
    """One-time (cached) probe for `pipeline_mode=pl.Buffered(1)` support.

    Weights/biases use a constant index_map, so single-buffering them halves
    the resident weight VMEM footprint (matters on v7x's 64 MiB VMEM once
    hidden sizes grow).  The probe compiles a tiny kernel once; no eager
    execution / host sync happens in the hot path.
    """
    buffered = getattr(pl, "Buffered", None)
    if buffered is None:
        return {}
    kwargs = dict(pipeline_mode=buffered(1))
    try:
        def probe(x_ref, w_ref, o_ref):
            o_ref[...] = x_ref[...] + w_ref[...]

        fn = pl.pallas_call(
            probe,
            out_shape=jax.ShapeDtypeStruct((8, 128), jnp.float32),
            grid_spec=pl.GridSpec(
                grid=(1,),
                in_specs=[pl.BlockSpec((8, 128), lambda i: (0, 0)),
                          pl.BlockSpec((8, 128), lambda i: (0, 0), **kwargs)],
                out_specs=pl.BlockSpec((8, 128), lambda i: (0, 0)),
            ),
        )
        abstract = jax.ShapeDtypeStruct((8, 128), jnp.float32)
        jax.jit(fn).lower(abstract, abstract).compile()
        return kwargs
    except Exception:
        return {}


def _make_encoder_kernel(num_hidden, repr_pad, compute_dtype):
    """x -> [Linear + ReLU]*num_hidden -> fused [mu | log_var] -> (mu, sigma)."""

    def kernel(*refs):
        x_ref = refs[0]
        mu_ref, sigma_ref = refs[-2], refs[-1]
        wb = refs[1:-2]  # alternating (W, b); last pair is the fused head

        h = x_ref[...]
        for layer in range(num_hidden):
            w = wb[2 * layer][...]
            b = wb[2 * layer + 1][...]
            h = jnp.dot(h, w, preferred_element_type=jnp.float32) + b
            h = jnp.maximum(h, 0.0)
            # TODO(synk): Dropout(p > 0) in training mode is not implemented;
            # the module default p=0.0 (and eval mode) makes it the identity.
            if compute_dtype is not None:
                h = h.astype(compute_dtype)  # keep the bf16 MXU path

        w_heads = wb[2 * num_hidden][...]
        b_heads = wb[2 * num_hidden + 1][...]
        heads = jnp.dot(h, w_heads, preferred_element_type=jnp.float32) + b_heads
        # Lane-aligned split: [mu_pad128 | log_var_pad128].
        mu_ref[...] = heads[:, :repr_pad].astype(mu_ref.dtype)
        # sigma = exp(log_var / 2): exp lowers to the EUP slot, idle otherwise.
        sigma_ref[...] = jnp.exp(0.5 * heads[:, repr_pad:]).astype(sigma_ref.dtype)

    return kernel


def _encode_mu_sigma(x, hidden_wb, w_mu, b_mu, w_log_var, b_log_var, *,
                     batch_tile=None, compute_dtype=jnp.bfloat16):
    """Fused encoder kernel. Returns (mu, sigma), both float32, shape (B, repr_dim)."""
    B, in_dim = x.shape
    repr_dim = w_mu.shape[1]
    repr_pad = _round_up(repr_dim, 128)

    # Pad each head independently to 128 lanes, then fuse: [mu_pad | log_var_pad].
    def pad_head(w, b):
        if repr_pad != repr_dim:
            w = jnp.pad(w, ((0, 0), (0, repr_pad - repr_dim)))
            b = jnp.pad(b, ((0, 0), (0, repr_pad - repr_dim)))
        return w, b

    w_mu_p, b_mu_p = pad_head(w_mu, b_mu)
    w_lv_p, b_lv_p = pad_head(w_log_var, b_log_var)
    w_heads = jnp.concatenate([w_mu_p, w_lv_p], axis=1)
    b_heads = jnp.concatenate([b_mu_p, b_lv_p], axis=1)

    layers = list(hidden_wb) + [(w_heads, b_heads)]

    # bf16 compute path (v6e/v7x MXU): cast x + weights; biases / accumulation
    # stay f32.  Pass compute_dtype=None for a pure-f32 path (e.g. v5e debug).
    if compute_dtype is not None:
        x = x.astype(compute_dtype)
        layers = [(w.astype(compute_dtype), b) for (w, b) in layers]

    itemsize = jnp.dtype(x.dtype).itemsize
    align = 16 if itemsize < 4 else 8  # bf16 min tile is (16, 128)
    if batch_tile is None:
        # v6e/v7x defaults; pass batch_tile=128 on v5e (4x128 MXU already full).
        batch_tile = 512 if itemsize < 4 else 256

    if B <= batch_tile:
        bt = B  # single block == full batch dim (allowed even if unaligned)
    else:
        bt = max(align, (batch_tile // align) * align)
    # TODO(synk): on v7x (2 TensorCores), for large B cap bt at ~B//2 so the
    # "parallel" batch axis has >= 2 steps and shards across both cores; and at
    # omics-scale in_features (tens of thousands) add a K-tiling grid axis for
    # the first layer instead of holding its full weight resident in VMEM.

    # Pad batch up to a multiple of bt -> no masked partial last block.
    B_pad = pl.cdiv(B, bt) * bt
    if B_pad != B:
        x = jnp.pad(x, ((0, B_pad - B), (0, 0)))
    grid = (B_pad // bt,)

    flat_params = [p for wb in layers for p in wb]
    weight_kwargs = _weight_pipeline_kwargs()

    # VMEM budget estimate -> explicit limit (v7x has only 64 MiB physical).
    weight_bufs = 1 if weight_kwargs else 2
    weight_bytes = sum(w.size * w.dtype.itemsize + b.size * b.dtype.itemsize
                       for w, b in layers)
    vmem_est = (weight_bufs * weight_bytes
                + 2 * bt * in_dim * itemsize        # double-buffered x tile
                + 2 * 2 * bt * repr_pad * 4         # two f32 outputs, double-buffered
                + (4 << 20))                        # activations / scratch headroom
    vmem_limit = int(min(max(vmem_est, 32 << 20), 96 << 20))

    # Dtype-aware advisory cost estimate for XLA's scheduler.
    flops = 2 * B_pad * sum(w.shape[0] * w.shape[1] for w, _ in layers)
    bytes_accessed = (x.size * itemsize + weight_bytes + 2 * B_pad * repr_pad * 4)
    cost = pl.CostEstimate(flops=flops, transcendentals=B_pad * repr_pad,
                           bytes_accessed=bytes_accessed)

    in_specs = [pl.BlockSpec((bt, in_dim), lambda i: (i, 0))]
    for w, b in layers:
        in_specs.append(pl.BlockSpec(w.shape, lambda i: (0, 0), **weight_kwargs))
        in_specs.append(pl.BlockSpec(b.shape, lambda i: (0, 0), **weight_kwargs))

    kernel = _make_encoder_kernel(len(hidden_wb), repr_pad, compute_dtype)

    mu_pad, sigma_pad = pl.pallas_call(
        kernel,
        out_shape=(jax.ShapeDtypeStruct((B_pad, repr_pad), jnp.float32),
                   jax.ShapeDtypeStruct((B_pad, repr_pad), jnp.float32)),
        grid_spec=pl.GridSpec(
            grid=grid,
            in_specs=in_specs,
            out_specs=(pl.BlockSpec((bt, repr_pad), lambda i: (i, 0)),
                       pl.BlockSpec((bt, repr_pad), lambda i: (i, 0))),
        ),
        compiler_params=pltpu.CompilerParams(
            dimension_semantics=("parallel",),
            vmem_limit_bytes=vmem_limit,
        ),
        cost_estimate=cost,
    )(x, *flat_params)

    # Lane-aligned (start=0) slices; batch padding rows dropped.
    mu = mu_pad[:B, :repr_dim]
    sigma = sigma_pad[:B, :repr_dim]
    return mu, sigma


def variational_encoder_forward2(x, hidden_wb, w_mu, b_mu, w_log_var, b_log_var,
                                 key, **kw):
    """Equivalent of VariationalEncoder.forward2: returns (z, mu, sigma)."""
    mu, sigma = _encode_mu_sigma(x, hidden_wb, w_mu, b_mu, w_log_var, b_log_var, **kw)
    # TODO(synk): the reparameterized sample (eps ~ N(0,1)) uses jax.random in
    # the wrapper; it could be fused in-kernel with pltpu.prng_seed/prng_random_bits.
    eps = jax.random.normal(key, mu.shape, mu.dtype)
    z = mu + sigma * eps
    return z, mu, sigma


def variational_encoder_forward(x, hidden_wb, w_mu, b_mu, w_log_var, b_log_var,
                                *, use_mean=True, key=None, **kw):
    """Equivalent of VariationalEncoder.forward: mu if use_mean else z."""
    mu, sigma = _encode_mu_sigma(x, hidden_wb, w_mu, b_mu, w_log_var, b_log_var, **kw)
    if use_mean:
        return mu
    eps = jax.random.normal(key, mu.shape, mu.dtype)
    return mu + sigma * eps


def _init_linear(key, fan_in, fan_out, dtype=jnp.float32):
    """Deterministic init mimicking torch.nn.Linear (uniform +/- 1/sqrt(fan_in)).

    Weight is returned as (fan_in, fan_out) so the kernel computes x @ W + b.
    """
    kw, kb = jax.random.split(key)
    bound = 1.0 / (fan_in ** 0.5)
    w = jax.random.uniform(kw, (fan_in, fan_out), dtype, minval=-bound, maxval=bound)
    b = jax.random.uniform(kb, (1, fan_out), dtype, minval=-bound, maxval=bound)
    return w, b


if __name__ == "__main__":
    # Module hyper-params (small, consistent with the PyTorch __init__):
    #   in_features=256, hidden=[128, 64], repr_dim=32, batch=16
    in_features = 256
    hidden = [128, 64]
    repr_dim = 32
    batch = 16

    key = jax.random.PRNGKey(0)
    k_x, k1, k2, k_mu, k_lv, k_eps = jax.random.split(key, 6)

    x = jax.random.normal(k_x, (batch, in_features), jnp.float32)

    w1, b1 = _init_linear(k1, in_features, hidden[0])      # 256 -> 128
    w2, b2 = _init_linear(k2, hidden[0], hidden[1])        # 128 -> 64
    w_mu, b_mu = _init_linear(k_mu, hidden[1], repr_dim)   # 64 -> 32  (linear2)
    w_lv, b_lv = _init_linear(k_lv, hidden[1], repr_dim)   # 64 -> 32  (linear3)
    hidden_wb = [(w1, b1), (w2, b2)]

    # Prime the Buffered(1) probe once, outside any jit trace.
    _weight_pipeline_kwargs()

    fwd = jax.jit(lambda xx: variational_encoder_forward(
        xx, hidden_wb, w_mu, b_mu, w_lv, b_lv))
    fwd2 = jax.jit(lambda xx, kk: variational_encoder_forward2(
        xx, hidden_wb, w_mu, b_mu, w_lv, b_lv, kk))

    # forward() with module defaults (use_mean=True) returns mu.
    mu = jax.block_until_ready(fwd(x))
    # forward2() additionally returns z and sigma.
    z, mu2, sigma = fwd2(x, k_eps)
    z = jax.block_until_ready(z)

    # Pure-JAX references: (a) same bf16 compute path as the kernel, (b) pure f32.
    def reference(xx, cd):
        h = xx.astype(cd) if cd is not None else xx
        for w, b in hidden_wb:
            wc = w.astype(cd) if cd is not None else w
            h = jnp.maximum(jnp.dot(h, wc, preferred_element_type=jnp.float32) + b, 0.0)
            if cd is not None:
                h = h.astype(cd)
        wm = w_mu.astype(cd) if cd is not None else w_mu
        wl = w_lv.astype(cd) if cd is not None else w_lv
        mu_r = jnp.dot(h, wm, preferred_element_type=jnp.float32) + b_mu
        lv_r = jnp.dot(h, wl, preferred_element_type=jnp.float32) + b_lv
        return mu_r, jnp.exp(0.5 * lv_r)

    mu_bf, sigma_bf = reference(x, jnp.bfloat16)
    mu_f32, sigma_f32 = reference(x, None)

    assert mu.shape == (batch, repr_dim), mu.shape
    assert z.shape == (batch, repr_dim), z.shape
    assert jnp.allclose(mu, mu_bf, atol=2e-3, rtol=2e-3), "mu mismatch vs bf16 reference"
    assert jnp.allclose(mu2, mu_bf, atol=2e-3, rtol=2e-3), "mu mismatch (forward2)"
    assert jnp.allclose(sigma, sigma_bf, atol=2e-3, rtol=2e-3), "sigma mismatch vs bf16 reference"
    assert jnp.allclose(mu, mu_f32, atol=5e-2, rtol=5e-2), "mu mismatch vs f32 reference"
    assert jnp.allclose(sigma, sigma_f32, atol=5e-2, rtol=5e-2), "sigma mismatch vs f32 reference"
    assert bool(jnp.all(jnp.isfinite(z))), "z not finite"

    print("KERNEL_OK")
</pallas_src>

<mosaic_0001>
module attributes {stable_mosaic.version = 11 : i64} {
  func.func @kernel(%arg0: i32, %arg1: memref<16x256xbf16, #tpu.memory_space<vmem>>, %arg2: memref<256x128xbf16, #tpu.memory_space<vmem>>, %arg3: memref<1x128xf32, #tpu.memory_space<vmem>>, %arg4: memref<128x64xbf16, #tpu.memory_space<vmem>>, %arg5: memref<1x64xf32, #tpu.memory_space<vmem>>, %arg6: memref<64x256xbf16, #tpu.memory_space<vmem>>, %arg7: memref<1x256xf32, #tpu.memory_space<vmem>>, %arg8: memref<16x128xf32, #tpu.memory_space<vmem>>, %arg9: memref<16x128xf32, #tpu.memory_space<vmem>>) attributes {dimension_semantics = [#tpu.dimension_semantics<parallel>], iteration_bounds = array<i64: 1>, scalar_prefetch = 0 : i64, scratch_operands = 0 : i64, tpu.core_type = #tpu.core_type<tc>, window_params = [{transform_indices = @transform_0, window_bounds = array<i64: 16, 256>}, {pipeline_mode = #tpu.pipeline_mode<synchronous>, transform_indices = @transform_1, window_bounds = array<i64: 256, 128>}, {pipeline_mode = #tpu.pipeline_mode<synchronous>, transform_indices = @transform_2, window_bounds = array<i64: 1, 128>}, {pipeline_mode = #tpu.pipeline_mode<synchronous>, transform_indices = @transform_3, window_bounds = array<i64: 128, 64>}, {pipeline_mode = #tpu.pipeline_mode<synchronous>, transform_indices = @transform_4, window_bounds = array<i64: 1, 64>}, {pipeline_mode = #tpu.pipeline_mode<synchronous>, transform_indices = @transform_5, window_bounds = array<i64: 64, 256>}, {pipeline_mode = #tpu.pipeline_mode<synchronous>, transform_indices = @transform_6, window_bounds = array<i64: 1, 256>}, {transform_indices = @transform_7, window_bounds = array<i64: 16, 128>}, {transform_indices = @transform_8, window_bounds = array<i64: 16, 128>}]} {
    %c0 = arith.constant 0 : index
    %c0_0 = arith.constant 0 : index
    %0 = vector.load %arg1[%c0, %c0_0] : memref<16x256xbf16, #tpu.memory_space<vmem>>, vector<16x256xbf16>
    %c0_1 = arith.constant 0 : index
    %c0_2 = arith.constant 0 : index
    %1 = vector.load %arg2[%c0_1, %c0_2] : memref<256x128xbf16, #tpu.memory_space<vmem>>, vector<256x128xbf16>
    %c0_3 = arith.constant 0 : index
    %c0_4 = arith.constant 0 : index
    %2 = vector.load %arg3[%c0_3, %c0_4] : memref<1x128xf32, #tpu.memory_space<vmem>>, vector<1x128xf32>
    %cst = arith.constant dense<0.000000e+00> : vector<16x128xf32>
    %3 = tpu.matmul %0, %1, %cst {dimension_numbers = #tpu.dot_dimension_numbers<[1], [0], [0], [1], [0, 0, 1, 1], [], []>} : vector<16x256xbf16>, vector<256x128xbf16>, vector<16x128xf32> -> vector<16x128xf32>
    %4 = vector.broadcast %2 : vector<1x128xf32> to vector<16x128xf32>
    %5 = arith.addf %3, %4 : vector<16x128xf32>
    %cst_5 = arith.constant 0.000000e+00 : f32
    %6 = vector.broadcast %cst_5 : f32 to vector<16x128xf32>
    %7 = arith.maximumf %5, %6 : vector<16x128xf32>
    %8 = arith.truncf %7 : vector<16x128xf32> to vector<16x128xbf16>
    %c0_6 = arith.constant 0 : index
    %c0_7 = arith.constant 0 : index
    %9 = vector.load %arg4[%c0_6, %c0_7] : memref<128x64xbf16, #tpu.memory_space<vmem>>, vector<128x64xbf16>
    %c0_8 = arith.constant 0 : index
    %c0_9 = arith.constant 0 : index
    %10 = vector.load %arg5[%c0_8, %c0_9] : memref<1x64xf32, #tpu.memory_space<vmem>>, vector<1x64xf32>
    %cst_10 = arith.constant dense<0.000000e+00> : vector<16x64xf32>
    %11 = tpu.matmul %8, %9, %cst_10 {dimension_numbers = #tpu.dot_dimension_numbers<[1], [0], [0], [1], [0, 0, 1, 1], [], []>} : vector<16x128xbf16>, vector<128x64xbf16>, vector<16x64xf32> -> vector<16x64xf32>
    %12 = vector.broadcast %10 : vector<1x64xf32> to vector<16x64xf32>
    %13 = arith.addf %11, %12 : vector<16x64xf32>
    %cst_11 = arith.constant 0.000000e+00 : f32
    %14 = vector.broadcast %cst_11 : f32 to vector<16x64xf32>
    %15 = arith.maximumf %13, %14 : vector<16x64xf32>
    %16 = arith.truncf %15 : vector<16x64xf32> to vector<16x64xbf16>
    %c0_12 = arith.constant 0 : index
    %c0_13 = arith.constant 0 : index
    %17 = vector.load %arg6[%c0_12, %c0_13] : memref<64x256xbf16, #tpu.memory_space<vmem>>, vector<64x256xbf16>
    %c0_14 = arith.constant 0 : index
    %c0_15 = arith.constant 0 : index
    %18 = vector.load %arg7[%c0_14, %c0_15] : memref<1x256xf32, #tpu.memory_space<vmem>>, vector<1x256xf32>
    %cst_16 = arith.constant dense<0.000000e+00> : vector<16x256xf32>
    %19 = tpu.matmul %16, %17, %cst_16 {dimension_numbers = #tpu.dot_dimension_numbers<[1], [0], [0], [1], [0, 0, 1, 1], [], []>} : vector<16x64xbf16>, vector<64x256xbf16>, vector<16x256xf32> -> vector<16x256xf32>
    %20 = vector.broadcast %18 : vector<1x256xf32> to vector<16x256xf32>
    %21 = arith.addf %19, %20 : vector<16x256xf32>
    %22 = vector.extract_strided_slice %21 {offsets = [0, 0], sizes = [16, 128], strides = [1, 1]} : vector<16x256xf32> to vector<16x128xf32>
    %c0_17 = arith.constant 0 : index
    %c0_18 = arith.constant 0 : index
    %23 = vector.load %arg8[%c0_17, %c0_18] : memref<16x128xf32, #tpu.memory_space<vmem>>, vector<16x128xf32>
    tpu.vector_store %arg8[%c0_17, %c0_18], %22 {strides = array<i32>} : memref<16x128xf32, #tpu.memory_space<vmem>>, vector<16x128xf32>,
    %24 = vector.extract_strided_slice %21 {offsets = [0, 128], sizes = [16, 128], strides = [1, 1]} : vector<16x256xf32> to vector<16x128xf32>
    %cst_19 = arith.constant 5.000000e-01 : f32
    %25 = vector.broadcast %cst_19 : f32 to vector<16x128xf32>
    %26 = arith.mulf %25, %24 : vector<16x128xf32>
    %27 = math.exp %26 : vector<16x128xf32>
    %c0_20 = arith.constant 0 : index
    %c0_21 = arith.constant 0 : index
    %28 = vector.load %arg9[%c0_20, %c0_21] : memref<16x128xf32, #tpu.memory_space<vmem>>, vector<16x128xf32>
    tpu.vector_store %arg9[%c0_20, %c0_21], %27 {strides = array<i32>} : memref<16x128xf32, #tpu.memory_space<vmem>>, vector<16x128xf32>,
    return
  }
  func.func @transform_0(%arg0: i32) -> (i32, i32) {
    %c0_i32 = arith.constant 0 : i32
    %c0_i32_0 = arith.constant 0 : i32
    return %arg0, %c0_i32 : i32, i32
  }
  func.func @transform_1(%arg0: i32) -> (i32, i32) {
    %c0_i32 = arith.constant 0 : i32
    %c0_i32_0 = arith.constant 0 : i32
    %c0_i32_1 = arith.constant 0 : i32
    return %c0_i32, %c0_i32_0 : i32, i32
  }
  func.func @transform_2(%arg0: i32) -> (i32, i32) {
    %c0_i32 = arith.constant 0 : i32
    %c0_i32_0 = arith.constant 0 : i32
    %c0_i32_1 = arith.constant 0 : i32
    return %c0_i32, %c0_i32_0 : i32, i32
  }
  func.func @transform_3(%arg0: i32) -> (i32, i32) {
    %c0_i32 = arith.constant 0 : i32
    %c0_i32_0 = arith.constant 0 : i32
    %c0_i32_1 = arith.constant 0 : i32
    return %c0_i32, %c0_i32_0 : i32, i32
  }
  func.func @transform_4(%arg0: i32) -> (i32, i32) {
    %c0_i32 = arith.constant 0 : i32
    %c0_i32_0 = arith.constant 0 : i32
    %c0_i32_1 = arith.constant 0 : i32
    return %c0_i32, %c0_i32_0 : i32, i32
  }
  func.func @transform_5(%arg0: i32) -> (i32, i32) {
    %c0_i32 = arith.constant 0 : i32
    %c0_i32_0 = arith.constant 0 : i32
    %c0_i32_1 = arith.constant 0 : i32
    return %c0_i32, %c0_i32_0 : i32, i32
  }
  func.func @transform_6(%arg0: i32) -> (i32, i32) {
    %c0_i32 = arith.constant 0 : i32
    %c0_i32_0 = arith.constant 0 : i32
    %c0_i32_1 = arith.constant 0 : i32
    return %c0_i32, %c0_i32_0 : i32, i32
  }
  func.func @transform_7(%arg0: i32) -> (i32, i32) {
    %c0_i32 = arith.constant 0 : i32
    %c0_i32_0 = arith.constant 0 : i32
    return %arg0, %c0_i32 : i32, i32
  }
  func.func @transform_8(%arg0: i32) -> (i32, i32) {
    %c0_i32 = arith.constant 0 : i32
    %c0_i32_0 = arith.constant 0 : i32
    return %arg0, %c0_i32 : i32, i32
  }
}

</mosaic_0001>

<bundles_post_ra>
// kernel: _lambda_.1
= control target key start
LH: loop header
LB: loop body
LE: loop exit
PB: predicated region body
PF: predicated region fallthrough
CT: control target
= control target key end

     0   :  { %14 = vsyncpa [#allocation3], 0  ;;  %s876_s0 = inlined_call_operand.vmem [shape: bf16[16,256], index: 0, kind: input, shape index: {}]   ;;  %s877_s1 = inlined_call_operand.hbm [shape: bf16[256,128], index: 1, kind: input, shape index: {}]   ;;  %s878_s2 = inlined_call_operand.vmem [shape: f32[1,128], index: 2, kind: input, shape index: {}]   ;;  %s879_s3 = inlined_call_operand.hbm [shape: bf16[128,64], index: 3, kind: input, shape index: {}]   ;;  %s880_s4 = inlined_call_operand.vmem [shape: f32[1,64], index: 4, kind: input, shape index: {}]   ;;  %s881_s5 = inlined_call_operand.hbm [shape: bf16[64,256], index: 5, kind: input, shape index: {}]   ;;  %s882_s6 = inlined_call_operand.vmem [shape: f32[1,256], index: 6, kind: input, shape index: {}]   ;;  %s883_s7 = inlined_call_operand.hbm [shape: f32[16,128], index: 7, kind: output, shape index: {0}]   ;;  %s884_s8 = inlined_call_operand.hbm [shape: f32[16,128], index: 8, kind: output, shape index: {1}]  }
   0x1   :  { %15 = vsyncpa [#allocation6], 0 }
   0x2   :  { %16 = vsyncpa [#allocation4], 0 }
   0x3   :  { %17 = vsyncpa [#allocation10], 0  ;;  %s780_s27 = smov [#allocation5]   ;;  %s781_s29 = smov [#allocation2]  }
   0x4   :  { %s39_s28 = sshll.u32 %s780_s27, 4  ;;  %s25_s30 = sshll.u32 %s781_s29, 4  ;;  %s40_s28 = int_to_ptr.vmem [resolvable:$true] %s39_s28  ;;  %s26_s30 = int_to_ptr.vmem [resolvable:$true] %s25_s30 }
   0x5   :  { %s680_s9 = scalar_lea.vmem %s40_s28, 1024  ;;  %p685_p1 = scmp.lt.s32.totalorder %s40_s28, %s40_s28 }
   0x6   :  { %p681_p0 = scmp.ne.s32.totalorder %s40_s28, %s680_s9  ;;  %p686_p2 = scmp.lt.s32.totalorder %s680_s9, %s680_s9 }
   0x8   :  { %p687_p3 = por %p686_p2, %p685_p1 }
   0xa   :  { %p688_p4 = pnand %p687_p3, %p681_p0 }
   0xc   :  { %691 = shalt.err (!%p688_p4)
}
   0xd   :  { %s782_s10 = smov 64   ;;  %s783_s11 = smov 4  }
   0xe   :  { %45 = dma.hbm_to_vmem [thread:$0]  %s879_s3, 1024, %s40_s28, [#allocation6], %s782_s10, %s782_s10, %s783_s11  }
   0xf   :  { %s700_s14 = scalar_lea.vmem %s26_s30, 2048  ;;  %p705_p6 = scmp.lt.s32.totalorder %s26_s30, %s26_s30 }
  0x10   :  { %p701_p5 = scmp.ne.s32.totalorder %s26_s30, %s700_s14  ;;  %p706_p7 = scmp.lt.s32.totalorder %s700_s14, %s700_s14 }
  0x12   :  { %p707_p8 = por %p706_p7, %p705_p6 }
  0x14   :  { %p708_p9 = pnand %p707_p8, %p701_p5 }
  0x16   :  { %711 = shalt.err (!%p708_p9)
}
  0x17   :  { %31 = dma.hbm_to_vmem [thread:$0]  %s877_s1, 2048, %s26_s30, [#allocation3], %s782_s10, %s782_s10, %s783_s11  }
  0x18   :  { %s784_s17 = smov [#allocation7]  }
  0x19   :  { %s53_s18 = sshll.u32 %s784_s17, 4  ;;  %s54_s18 = int_to_ptr.vmem [resolvable:$true] %s53_s18 }
  0x1a   :  { %s720_s19 = scalar_lea.vmem %s54_s18, 1024  ;;  %p725_p11 = scmp.lt.s32.totalorder %s54_s18, %s54_s18 }
  0x1b   :  { %p721_p10 = scmp.ne.s32.totalorder %s54_s18, %s720_s19  ;;  %p726_p12 = scmp.lt.s32.totalorder %s720_s19, %s720_s19 }
  0x1d   :  { %p727_p13 = por %p726_p12, %p725_p11 }
  0x1f   :  { %p728_p0 = pnand %p727_p13, %p721_p10 }
  0x21   :  { %731 = shalt.err (!%p728_p0)
}
  0x22   :  { %s785_s3 = smov 128   ;;  %s786_s20 = smov 8  }
  0x23   :  { %59 = dma.hbm_to_vmem [thread:$0]  %s881_s5, 1024, %s54_s18, [#allocation6], %s785_s3, %s785_s3, %s786_s20  }
  0x24   :  { %772 = dma.done.wait [#allocation3], 2048  }
  0x25   :  { %773 = vsyncadd [#allocation3], 4294965248 }
  0x26   :  { %774 = dma.done.wait [#allocation6], 2048  }
  0x27   :  { %775 = vsyncadd [#allocation6], 4294965248  ;;  %v787_v0 = vmov 0.0   ;;  %v629_v1 = vld [vmem:[#allocation2 + $0x78] sm:$0xff]   ;;  %v631_v3 = vld [vmem:[#allocation2 + $0x70] sm:$0xff]   ;;  %vm788_vm0 = vmmov 0   ;;  %v388_v58 = vlaneseq }
  0x28   :  { %597 = vmatprep.subr.bf16.mxu1 %v787_v0  ;;  %v630_v2 = vld [vmem:[#allocation2 + $0x38] sm:$0xff]   ;;  %566 = vmatprep.subr.bf16.mxu0 %v629_v1  ;;  %v632_v4 = vld [vmem:[#allocation2 + $0x30] sm:$0xff]   ;;  %v633_v5 = vld [vmem:[#allocation2 + $0x68] sm:$0xff]   ;;  %v789_v47 = vmov 0   ;;  %vm438_vm1 = vcmask 523264  }
  0x29   :  { %567 = vmatpush3.bf16.msra.mxu0 %v630_v2  ;;  %v634_v6 = vld [vmem:[#allocation2 + $0x28] sm:$0xff]   ;;  %v635_v7 = vld [vmem:[#allocation2 + $0x60] sm:$0xff]   ;;  %v637_v9 = vld [vmem:[#allocation2 + $0x58] sm:$0xff]   ;;  %613 = vmatprep.mubr.msk.bf16.mxu1 %vm788_vm0, %v787_v0  ;;  %v389_v59 = vshrl.u32 %v388_v58, 7 }
  0x2a   :  { %568 = vmatprep.subr.bf16.mxu0 %v631_v3  ;;  %v636_v8 = vld [vmem:[#allocation2 + $0x20] sm:$0xff]   ;;  %v638_v10 = vld [vmem:[#allocation2 + $0x18] sm:$0xff]   ;;  %v639_v11 = vld [vmem:[#allocation2 + $0x50] sm:$0xff]  }
  0x2b   :  { %v640_v12 = vld [vmem:[#allocation2 + $0x10] sm:$0xff]   ;;  %v647_v13 = vld [vmem:[%s876_s0 + $0x4] ss:$8 sps:$4 sm:$0xff]   ;;  %v648_v14 = vld [vmem:[#allocation5 + $0x38] sm:$0xff]   ;;  %v390_v60 = vsub.s32 0, %v389_v59  ;;  %v394_v62 = vsub.s32 1, %v389_v59 }
  0x2c   :  { %v641_v15 = vld [vmem:[#allocation2 + $0x48] sm:$0xff]   ;;  %251 = vmatprep.mubr.bf16.mxu0 %v647_v13  ;;  %598 = vmatpush3.bf16.msra.mxu1 %v648_v14  ;;  %v649_v16 = vld [vmem:[#allocation5 + $0x30] sm:$0xff]   ;;  %v643_v18 = vld [vmem:[#allocation2 + $0x40] sm:$0xff]  }
  0x2d   :  { %569 = vmatpush3.bf16.msra.mxu0 %v632_v4  ;;  %v642_v17 = vld [vmem:[#allocation2 + $0x8] sm:$0xff]   ;;  %599 = vmatprep.subr.bf16.mxu1 %v787_v0  ;;  %v644_v20 = vld [vmem:[#allocation2] sm:$0xff]   ;;  %v652_v23 = vld [vmem:[#allocation5 + $0x18] sm:$0xff]  }
  0x2e   :  { %570 = vmatprep.subr.bf16.mxu0 %v633_v5  ;;  %v650_v19 = vld [vmem:[#allocation5 + $0x28] sm:$0xff]   ;;  %v651_v21 = vld [vmem:[#allocation5 + $0x20] sm:$0xff]   ;;  %v653_v24 = vld [vmem:[#allocation5 + $0x10] sm:$0xff]  }
  0x2f   :  { %v645_v22 = vld [vmem:[%s876_s0] ss:$8 sps:$4 sm:$0xff]   ;;  %v656_v27 = vld [vmem:[#allocation7 + $0x30] ss:$8 sps:$4 sm:$0xff]   ;;  %v658_v28 = vld [vmem:[#allocation7 + $0x34] ss:$8 sps:$4 sm:$0xff]  }
  0x30   :  { %600 = vmatpush3.bf16.msra.mxu1 %v649_v16  ;;  %v654_v25 = vld [vmem:[#allocation5 + $0x8] sm:$0xff]   ;;  %v655_v26 = vld [vmem:[#allocation5] sm:$0xff]   ;;  %v664_v43 = vld [vmem:[#allocation7 + $0x14] ss:$8 sps:$4 sm:$0xff]  }
  0x31   :  { %571 = vmatpush3.bf16.msra.mxu0 %v634_v6  ;;  %601 = vmatprep.subr.bf16.mxu1 %v787_v0  ;;  %v661_v29 = vld [vmem:[#allocation7 + $0x24] ss:$8 sps:$4 sm:$0xff]   ;;  %v659_v30 = vld [vmem:[#allocation7 + $0x20] ss:$8 sps:$4 sm:$0xff]   ;;  %v662_v44 = vld [vmem:[#allocation7 + $0x10] ss:$8 sps:$4 sm:$0xff]  }
  0x32   :  { %572 = vmatprep.subr.bf16.mxu0 %v635_v7  ;;  %v529_v34 = vld [vmem:[%s878_s2] ss:$0 sm:$0xff]  ;;  %v667_v45 = vld [vmem:[#allocation7 + $0x4] ss:$8 sps:$4 sm:$0xff]  }
  0x33   :  { %v665_v46 = vld [vmem:[#allocation7] ss:$8 sps:$4 sm:$0xff]  }
  0x34   :  { %602 = vmatpush3.bf16.msra.mxu1 %v650_v19  ;;  %v548_v48 = vld [vmem:[%s880_s4] ss:$0 sm:$0xff]  ;;  %s790_s4 = smov [#allocation8]  }
  0x35   :  { %573 = vmatpush3.bf16.msra.mxu0 %v636_v8  ;;  %603 = vmatprep.subr.bf16.mxu1 %v787_v0  ;;  %v386_v61 = vld [vmem:[%s882_s6] sm:$0x3]  ;;  %s500_s29 = sshll.u32 %s790_s4, 4  ;;  %s501_s29 = int_to_ptr.vmem [resolvable:$true] %s500_s29 }
  0x36   :  { %574 = vmatprep.subr.bf16.mxu0 %v637_v9  ;;  %v391_v63 = vrot.slane %v386_v61, %v390_v60  ;;  %s732_s30 = scalar_lea.vmem %s501_s29, 256  ;;  %p737_p2 = scmp.lt.s32.totalorder %s501_s29, %s501_s29 }
  0x37   :  { %p733_p1 = scmp.ne.s32.totalorder %s501_s29, %s732_s30  ;;  %p738_p3 = scmp.lt.s32.totalorder %s732_s30, %s732_s30 }
  0x38   :  { %604 = vmatpush3.bf16.msra.mxu1 %v651_v21 }
  0x39   :  { %575 = vmatpush3.bf16.msra.mxu0 %v638_v10  ;;  %605 = vmatprep.subr.bf16.mxu1 %v787_v0  ;;  %p739_p4 = por %p738_p3, %p737_p2 }
  0x3a   :  { %576 = vmatprep.subr.bf16.mxu0 %v639_v11 }
  0x3b   :  { %p740_p5 = pnand %p739_p4, %p733_p1 }
  0x3c   :  { %606 = vmatpush3.bf16.msra.mxu1 %v652_v23 }
  0x3d   :  { %577 = vmatpush3.bf16.msra.mxu0 %v640_v12  ;;  %607 = vmatprep.subr.bf16.mxu1 %v787_v0 }
  0x3e   :  { %578 = vmatprep.subr.bf16.mxu0 %v641_v15 }
  0x40   :  { %608 = vmatpush3.bf16.msra.mxu1 %v653_v24 }
  0x41   :  { %579 = vmatpush3.bf16.msra.mxu0 %v642_v17  ;;  %609 = vmatprep.subr.bf16.mxu1 %v787_v0 }
  0x42   :  { %580 = vmatprep.subr.bf16.mxu0 %v643_v18 }
  0x44   :  { %610 = vmatpush3.bf16.msra.mxu1 %v654_v25 }
  0x45   :  { %581 = vmatpush3.bf16.msra.mxu0 %v644_v20  ;;  %611 = vmatprep.subr.bf16.mxu1 %v787_v0  ;;  %v395_v0 = vrot.slane %v386_v61, %v394_v62 }
  0x46   :  { %450 = vmatprep.subr.bf16.mxu0 %v658_v28 }
  0x48   :  { %252 = vmatmul.mubr.bf16.vlgmr.msra.gmra.mxu0 %v645_v22  ;;  %612 = vmatpush3.bf16.msra.mxu1 %v655_v26 }
  0x49   :  { %451 = vmatpush1.bf16.msra.mxu0 %v656_v27  ;;  %474 = vmatprep.mubr.bf16.mxu0 %v789_v47 }
  0x4a   :  { %452 = vmatprep.subr.bf16.mxu0 %v661_v29 }
  0x4d   :  { %453 = vmatpush1.bf16.msra.mxu0 %v659_v30 }
  0x4e   :  { %454 = vmatprep.subr.bf16.mxu0 %v664_v43 }
  0x51   :  { %455 = vmatpush1.bf16.msra.mxu0 %v662_v44 }
  0x52   :  { %456 = vmatprep.subr.bf16.mxu0 %v667_v45 }
  0x55   :  { %457 = vmatpush1.bf16.msra.mxu0 %v665_v46 }
 0x108   :  { %v582_v31 = vpop.f32.mrf.mxu0 }
 0x10a   :  { %v583_v32 = vpop.f32.mrf.mxu0 }
 0x10b   :  { %v584_v33 = vadd.f32 %v583_v32, %v582_v31 }
 0x10c   :  { %v585_v35 = vpop.f32.mrf.mxu0 }
 0x10d   :  { %v254_v37 = vadd.f32 %v584_v33, %v529_v34 }
 0x10e   :  { %v586_v36 = vpop.f32.mrf.mxu0 }
 0x10f   :  { %v587_v38 = vadd.f32 %v586_v36, %v585_v35  ;;  %v260_v40 = vmax.f32 %v254_v37, 0.0 }
 0x111   :  { %v257_v39 = vadd.f32 %v587_v38, %v529_v34 }
 0x113   :  { %v261_v41 = vmax.f32 %v257_v39, 0.0 }
 0x115   :  { %v262_v42 = vpack.c.bf16 %v261_v41, %v260_v40 }
 0x117   :  { %614 = vmatmul.mubr.bf16.vlgmr.msra.gmra.mxu1 %v262_v42 }
 0x1d7   :  { %v368_v49 = vpop.f32.mrf.mxu1 }
 0x1d8   :  { %v369_v51 = vadd.f32 %v548_v48, %v368_v49 }
 0x1d9   :  { %v615_v50 = vpop.f32.mrf.mxu1 }
 0x1da   :  { %v375_v55 = vmax.f32 %v369_v51, 0.0 }
 0x1db   :  { %v371_v52 = vpop.f32.mrf.mxu1 }
 0x1dc   :  { %v372_v53 = vadd.f32 %v548_v48, %v371_v52 }
 0x1dd   :  { %v616_v54 = vpop.f32.mrf.mxu1 }
 0x1de   :  { %v376_v56 = vmax.f32 %v372_v53, 0.0 }
 0x1e0   :  { %v377_v57 = vpack.c.bf16 %v376_v56, %v375_v55 }
 0x1e2   :  { %565 = vmatmul.mubr.msk.bf16.vlgmr.msra.gmra.mxu0 %vm438_vm1, %v377_v57 }
 0x2a2   :  { %v476_v1 = vpop.f32.mrf.mxu0 }
 0x2a3   :  { %v477_v2 = vadd.f32 %v476_v1, %v391_v63 }
 0x2a4   :  { %v478_v3 = vpop.f32.mrf.mxu0 }
 0x2a5   :  { %485 = vst [vmem:[#allocation8] sm:$0xff] %v477_v2  ;;  %v479_v4 = vadd.f32 %v478_v3, %v395_v0 }
 0x2a6   :  { %v480_v5 = vpop.f32.mrf.mxu0 }
 0x2a7   :  { %v487_v6 = vmul.f32 0.5, %v479_v4  ;;  %v481_v7 = vadd.f32 %v480_v5, %v391_v63 }
 0x2a8   :  { %v482_v8 = vpop.f32.mrf.mxu0 }
 0x2a9   :  { %v489_v9 = vmul.f32 1.442695, %v487_v6  ;;  %486 = vst [vmem:[#allocation8 + $0x8] sm:$0xff] %v481_v7  ;;  %v483_v10 = vadd.f32 %v482_v8, %v395_v0 }
 0x2aa   :  { %743 = shalt.err (!%p740_p5)
}
 0x2ab   :  { %506 = dma.vmem_to_hbm [thread:$0]  %s501_s29, 256, %s883_s7, [#allocation4], %s785_s3, %s785_s3, %s786_s20   ;;  %668 = vpow2.f32 %v489_v9  ;;  %v488_v11 = vmul.f32 0.5, %v483_v10 }
 0x2ac   :  { %s791_s10 = smov [#allocation9]  }
 0x2ad   :  { %v491_v12 = vmul.f32 1.442695, %v488_v11  ;;  %s512_s11 = sshll.u32 %s791_s10, 4  ;;  %s513_s11 = int_to_ptr.vmem [resolvable:$true] %s512_s11 }
 0x2ae   :  { %s752_s12 = scalar_lea.vmem %s513_s11, 256  ;;  %p757_p7 = scmp.lt.s32.totalorder %s513_s11, %s513_s11 }
 0x2af   :  { %670 = vpow2.f32 %v491_v12  ;;  %p753_p6 = scmp.ne.s32.totalorder %s513_s11, %s752_s12  ;;  %p758_p8 = scmp.lt.s32.totalorder %s752_s12, %s752_s12 }
 0x2b1   :  { %p759_p9 = por %p758_p8, %p757_p7 }
 0x2b3   :  { %p760_p10 = pnand %p759_p9, %p753_p6 }
 0x2b8   :  { %v669_v13 = vpop.eup %668 }
 0x2b9   :  { %493 = vst [vmem:[#allocation9] sm:$0xff] %v669_v13 }
 0x2bc   :  { %v671_v14 = vpop.eup %670 }
 0x2bd   :  { %494 = vst [vmem:[#allocation9 + $0x8] sm:$0xff] %v671_v14 }
 0x2be   :  { %763 = shalt.err (!%p760_p10)
}
 0x2bf   :  { %518 = dma.vmem_to_hbm [thread:$0]  %s513_s11, 256, %s884_s8, [#allocation10], %s785_s3, %s785_s3, %s786_s20  }
 0x2c0   :  { %776 = dma.done.wait [#allocation4], 256  }
 0x2c1   :  { %777 = vsyncadd [#allocation4], 4294967040 }
 0x2c2   :  { %778 = dma.done.wait [#allocation10], 256  }
 0x2c3   :  { %779 = vsyncadd [#allocation10], 4294967040 }
 0x2c4   :  { %525 = vsyncpa [#allocation3], 1 }
 0x2c5   :  { %526 = vsyncpa [#allocation6], 1 }
 0x2c6   :  { %527 = vsyncpa [#allocation4], 1 }
 0x2c7   :  { %528 = vsyncpa [#allocation10], 1 }

</bundles_post_ra>
